<compile_context>
chip_gen: v7x
topology: tpu7x:2x2x1
jax: 0.10.0
libtpu: 0.0.40
codegen_flags: <defaults>
</compile_context>

<pallas_src>
import functools

import numpy as np
import jax
import jax.numpy as jnp
from jax.experimental import pallas as pl
from jax.experimental.pallas import tpu as pltpu

_MIB = 1024 * 1024


# ---------------------------------------------------------------------------
# Kernels
# ---------------------------------------------------------------------------

def _diff_kernel_hw(x_ref, d1x_ref, d1y_ref, d2x_ref, d2y_ref):
    """Block layout (TILE_BC, H, W): used when W % 128 == 0 (already lane-dense)."""
    x = x_ref[...]
    H, W = x.shape[1], x.shape[2]
    x_hp = pltpu.roll(x, H - 1, 1)   # x[(h+1)%H, w]
    x_hm = pltpu.roll(x, 1, 1)       # x[(h-1)%H, w]
    x_wp = pltpu.roll(x, W - 1, 2)   # x[h, (w+1)%W]
    x_wm = pltpu.roll(x, 1, 2)       # x[h, (w-1)%W]
    half = jnp.asarray(0.5, dtype=x.dtype)      # keep bf16 math in bf16
    d1x_ref[...] = (x_hp - x).astype(d1x_ref.dtype)
    d1y_ref[...] = (x_wp - x).astype(d1y_ref.dtype)
    d2x_ref[...] = (half * (x_hp - x_hm)).astype(d2x_ref.dtype)
    d2y_ref[...] = (half * (x_wp - x_wm)).astype(d2y_ref.dtype)


def _diff_kernel_flat(mask_ref, x_ref, d1x_ref, d1y_ref, d2x_ref, d2y_ref, *, W):
    """Block layout (TILE_BC, H*W): lane-dense even when W < 128.

    Periodic H-shifts are exact flat rolls by -+W.  Periodic W-shifts are flat
    rolls by -+1 everywhere except the wrapped column of each row, which is
    patched with a second roll selected by a precomputed wrap mask
    (mask_ref[0] -> w == W-1, mask_ref[1] -> w == 0).
    """
    x = x_ref[...]
    L = x.shape[1]                        # == H * W
    x_hp = pltpu.roll(x, L - W, 1)        # x[(h+1)%H, w]
    x_hm = pltpu.roll(x, W, 1)            # x[(h-1)%H, w]

    x_wp_bulk = pltpu.roll(x, L - 1, 1)         # x[h, w+1]   (wrong at w == W-1)
    x_wp_wrap = pltpu.roll(x, W - 1, 1)         # == x[h, 0]   at w == W-1
    x_wm_bulk = pltpu.roll(x, 1, 1)             # x[h, w-1]   (wrong at w == 0)
    x_wm_wrap = pltpu.roll(x, L - (W - 1), 1)   # == x[h, W-1] at w == 0

    wrap_p = mask_ref[0:1, :] != 0        # (1, L) bool, True at w == W-1
    wrap_m = mask_ref[1:2, :] != 0        # (1, L) bool, True at w == 0
    x_wp = jnp.where(wrap_p, x_wp_wrap, x_wp_bulk)
    x_wm = jnp.where(wrap_m, x_wm_wrap, x_wm_bulk)

    half = jnp.asarray(0.5, dtype=x.dtype)
    d1x_ref[...] = (x_hp - x).astype(d1x_ref.dtype)
    d1y_ref[...] = (x_wp - x).astype(d1y_ref.dtype)
    d2x_ref[...] = (half * (x_hp - x_hm)).astype(d2x_ref.dtype)
    d2y_ref[...] = (half * (x_wp - x_wm)).astype(d2y_ref.dtype)


# ---------------------------------------------------------------------------
# Tiling helpers (generation-aware)
# ---------------------------------------------------------------------------

def _vmem_capacity_bytes():
    try:
        info = pltpu.get_tpu_info()
        cap = getattr(info, "vmem_capacity_bytes", None)
        if cap:
            return int(cap)
    except Exception:
        pass
    return 128 * _MIB      # v5e/v6e default


def _sublane_pack(dtype_bytes):
    # Sublane packing multiple: 8 for 4-byte, 16 for 2-byte, 32 for 1-byte.
    return max(8, 32 // max(1, dtype_bytes))


def _pick_tile_bc(bc, row_elems, dtype_bytes, target_block_bytes):
    pack = _sublane_pack(dtype_bytes)
    rows = max(1, target_block_bytes // max(1, row_elems * dtype_bytes))
    # Keep v7x's two TensorCores busy: at least two grid tiles whenever BC can
    # be split without breaking sublane packing.
    if bc > pack:
        rows = min(rows, pl.cdiv(bc, 2))
    if rows >= bc:
        return bc
    rows = max(pack, (rows // pack) * pack)
    rows = min(rows, bc)
    # Prefer a divisor of BC so every grid step does a full, unmasked writeback.
    cand = rows
    while cand >= pack:
        if bc % cand == 0:
            return cand
        cand -= pack
    return rows


# ---------------------------------------------------------------------------
# Wrapper
# ---------------------------------------------------------------------------

def spatial_differential(x, boundary_mode="periodic", boundary_value=0,
                         *, tile_bc=None, out_dtype=None):
    """x: (B, C, H, W) -> (d1x, d1y, d2x, d2y), each (B, C, H, W)."""
    # TODO(synk): only boundary_mode='periodic' (the forward() default) is
    # implemented; 'constant'/'replicate' padding modes are not translated.
    if boundary_mode != "periodic":
        raise NotImplementedError("only boundary_mode='periodic' is implemented")

    B, C, H, W = x.shape
    BC = B * C
    in_dtype_bytes = jnp.dtype(x.dtype).itemsize
    out_dtype = x.dtype if out_dtype is None else jnp.dtype(out_dtype)
    out_dtype_bytes = jnp.dtype(out_dtype).itemsize

    # Generation-aware block / VMEM-limit choice.  Live VMEM per step is
    # roughly 2 buffers * (1 input + 4 output) blocks = 10 * block.
    vmem_cap = _vmem_capacity_bytes()
    if vmem_cap <= 64 * _MIB:            # v7x-class: 64 MiB VMEM per TensorCore
        target_block = 4 * _MIB
        vmem_limit = min(56 * _MIB, int(vmem_cap * 0.9))
    else:                                # v5e / v6e: 128 MiB VMEM
        target_block = 8 * _MIB
        vmem_limit = min(96 * _MIB, int(vmem_cap * 0.75))

    # Lane-dense layout choice: if W is already a 128-multiple keep (BC, H, W);
    # otherwise flatten (H, W) so vector stores aren't masked partial vst's.
    use_flat = (W % 128) != 0
    row_elems = H * W

    if tile_bc is None:
        tile_bc = _pick_tile_bc(BC, row_elems, in_dtype_bytes, target_block)
    grid = (pl.cdiv(BC, tile_bc),)

    n_elems = BC * H * W
    cost = pl.CostEstimate(
        flops=6 * n_elems,
        transcendentals=0,
        bytes_accessed=n_elems * in_dtype_bytes + 4 * n_elems * out_dtype_bytes)

    if use_flat:
        L = H * W
        x2 = x.reshape(BC, L)
        # Precompute the periodic-wrap masks on the host (no per-step iota/mod).
        w_np = np.arange(L, dtype=np.int64) % W
        masks = jnp.asarray(
            np.stack([(w_np == W - 1), (w_np == 0)]).astype(np.int32))
        in_specs = [
            pl.BlockSpec((2, L), lambda i: (0, 0)),           # resident masks
            pl.BlockSpec((tile_bc, L), lambda i: (i, 0)),
        ]
        out_block = pl.BlockSpec((tile_bc, L), lambda i: (i, 0))
        out_shape = tuple(jax.ShapeDtypeStruct((BC, L), out_dtype)
                          for _ in range(4))
        kernel = functools.partial(_diff_kernel_flat, W=W)
        args = (masks, x2)
    else:
        x2 = x.reshape(BC, H, W)
        in_specs = [pl.BlockSpec((tile_bc, H, W), lambda i: (i, 0, 0))]
        out_block = pl.BlockSpec((tile_bc, H, W), lambda i: (i, 0, 0))
        out_shape = tuple(jax.ShapeDtypeStruct((BC, H, W), out_dtype)
                          for _ in range(4))
        kernel = _diff_kernel_hw
        args = (x2,)

    outs = pl.pallas_call(
        kernel,
        out_shape=out_shape,
        grid=grid,
        in_specs=in_specs,
        out_specs=(out_block,) * 4,
        compiler_params=pltpu.CompilerParams(
            # "parallel" lets the runtime shard BC tiles across TensorCores on
            # multi-core parts; on single-TC chips it is a no-op.
            # TODO(synk): evaluate pltpu.CORE_PARALLEL / pl.core_map on v7x if
            # the default megacore partitioning leaves a core idle.
            dimension_semantics=("parallel",),
            vmem_limit_bytes=vmem_limit),
        cost_estimate=cost,
    )(*args)

    shp = (B, C, H, W)
    return tuple(o.reshape(shp) for o in outs)


# ---------------------------------------------------------------------------
# Reference + tests
# ---------------------------------------------------------------------------

def _reference(x):
    # Pure-JAX reference matching the torch module with periodic boundary.
    x_hp = jnp.roll(x, -1, axis=2)
    x_hm = jnp.roll(x, 1, axis=2)
    x_wp = jnp.roll(x, -1, axis=3)
    x_wm = jnp.roll(x, 1, axis=3)
    return (x_hp - x, x_wp - x, 0.5 * (x_hp - x_hm), 0.5 * (x_wp - x_wm))


def _check(x, tol=1e-5, **kw):
    outs = jax.block_until_ready(spatial_differential(x, **kw))
    refs = _reference(x)
    for o, r in zip(outs, refs):
        assert o.shape == x.shape
        err = jnp.max(jnp.abs(o.astype(jnp.float32) - r.astype(jnp.float32)))
        assert err < tol, float(err)


if __name__ == "__main__":
    key = jax.random.PRNGKey(0)
    k0, k1, k2, k3 = jax.random.split(key, 4)

    # Primary (module-scale small shape): lane-dense flattened path, f32.
    x = jax.random.normal(k0, (2, 4, 16, 16), dtype=jnp.float32)
    _check(x)

    # W % 128 == 0 path (native (BC, H, W) layout, 4 rolls, no mask).
    x128 = jax.random.normal(k1, (2, 4, 8, 128), dtype=jnp.float32)
    _check(x128)

    # Multi-tile grid with a partial final BC block (masked writeback path,
    # now exercised with tuple outputs).
    xpart = jax.random.normal(k2, (3, 4, 16, 16), dtype=jnp.float32)
    _check(xpart, tile_bc=8)

    # bf16 input (sublane packing = 16, bf16 math + bf16 outputs).
    xbf = jax.random.normal(k3, (2, 8, 16, 16), dtype=jnp.bfloat16)
    _check(xbf, tol=2e-2)

    print("KERNEL_OK")
</pallas_src>

<mosaic_0001>
module attributes {stable_mosaic.version = 11 : i64} {
  func.func @_diff_kernel_flat(%arg0: i32, %arg1: memref<2x256xi32, #tpu.memory_space<vmem>>, %arg2: memref<8x256xf32, #tpu.memory_space<vmem>>, %arg3: memref<8x256xf32, #tpu.memory_space<vmem>>, %arg4: memref<8x256xf32, #tpu.memory_space<vmem>>, %arg5: memref<8x256xf32, #tpu.memory_space<vmem>>, %arg6: memref<8x256xf32, #tpu.memory_space<vmem>>) attributes {dimension_semantics = [#tpu.dimension_semantics<parallel>], iteration_bounds = array<i64: 1>, scalar_prefetch = 0 : i64, scratch_operands = 0 : i64, tpu.core_type = #tpu.core_type<tc>, window_params = [{pipeline_mode = #tpu.pipeline_mode<synchronous>, transform_indices = @transform_0, window_bounds = array<i64: 2, 256>}, {transform_indices = @transform_1, window_bounds = array<i64: 8, 256>}, {transform_indices = @transform_2, window_bounds = array<i64: 8, 256>}, {transform_indices = @transform_3, window_bounds = array<i64: 8, 256>}, {transform_indices = @transform_4, window_bounds = array<i64: 8, 256>}, {transform_indices = @transform_5, window_bounds = array<i64: 8, 256>}]} {
    %c0 = arith.constant 0 : index
    %c0_0 = arith.constant 0 : index
    %0 = vector.load %arg2[%c0, %c0_0] : memref<8x256xf32, #tpu.memory_space<vmem>>, vector<8x256xf32>
    %c240_i32 = arith.constant 240 : i32
    %1 = tpu.dynamic_rotate %0 by %c240_i32 dim 1 : vector<8x256xf32>, i32 -> vector<8x256xf32>
    %c16_i32 = arith.constant 16 : i32
    %2 = tpu.dynamic_rotate %0 by %c16_i32 dim 1 : vector<8x256xf32>, i32 -> vector<8x256xf32>
    %c255_i32 = arith.constant 255 : i32
    %3 = tpu.dynamic_rotate %0 by %c255_i32 dim 1 : vector<8x256xf32>, i32 -> vector<8x256xf32>
    %c15_i32 = arith.constant 15 : i32
    %4 = tpu.dynamic_rotate %0 by %c15_i32 dim 1 : vector<8x256xf32>, i32 -> vector<8x256xf32>
    %c1_i32 = arith.constant 1 : i32
    %5 = tpu.dynamic_rotate %0 by %c1_i32 dim 1 : vector<8x256xf32>, i32 -> vector<8x256xf32>
    %c241_i32 = arith.constant 241 : i32
    %6 = tpu.dynamic_rotate %0 by %c241_i32 dim 1 : vector<8x256xf32>, i32 -> vector<8x256xf32>
    %c0_1 = arith.constant 0 : index
    %c0_2 = arith.constant 0 : index
    %7 = vector.load %arg1[%c0_1, %c0_2] : memref<2x256xi32, #tpu.memory_space<vmem>>, vector<1x256xi32>
    %c0_i32 = arith.constant 0 : i32
    %8 = vector.broadcast %c0_i32 : i32 to vector<1x256xi32>
    %9 = arith.cmpi ne, %7, %8 : vector<1x256xi32>
    %c1 = arith.constant 1 : index
    %c0_3 = arith.constant 0 : index
    %10 = vector.load %arg1[%c1, %c0_3] : memref<2x256xi32, #tpu.memory_space<vmem>>, vector<1x256xi32>
    %c0_i32_4 = arith.constant 0 : i32
    %11 = vector.broadcast %c0_i32_4 : i32 to vector<1x256xi32>
    %12 = arith.cmpi ne, %10, %11 : vector<1x256xi32>
    %13 = vector.shape_cast %9 : vector<1x256xi1> to vector<1x256xi1>
    %14 = vector.broadcast %13 : vector<1x256xi1> to vector<8x256xi1>
    %15 = arith.select %14, %4, %3 : vector<8x256xi1>, vector<8x256xf32>
    %16 = vector.shape_cast %12 : vector<1x256xi1> to vector<1x256xi1>
    %17 = vector.broadcast %16 : vector<1x256xi1> to vector<8x256xi1>
    %18 = arith.select %17, %6, %5 : vector<8x256xi1>, vector<8x256xf32>
    %19 = arith.subf %1, %0 : vector<8x256xf32>
    %c0_5 = arith.constant 0 : index
    %c0_6 = arith.constant 0 : index
    %20 = vector.load %arg3[%c0_5, %c0_6] : memref<8x256xf32, #tpu.memory_space<vmem>>, vector<8x256xf32>
    tpu.vector_store %arg3[%c0_5, %c0_6], %19 {strides = array<i32>} : memref<8x256xf32, #tpu.memory_space<vmem>>, vector<8x256xf32>,
    %21 = arith.subf %15, %0 : vector<8x256xf32>
    %c0_7 = arith.constant 0 : index
    %c0_8 = arith.constant 0 : index
    %22 = vector.load %arg4[%c0_7, %c0_8] : memref<8x256xf32, #tpu.memory_space<vmem>>, vector<8x256xf32>
    tpu.vector_store %arg4[%c0_7, %c0_8], %21 {strides = array<i32>} : memref<8x256xf32, #tpu.memory_space<vmem>>, vector<8x256xf32>,
    %23 = arith.subf %1, %2 : vector<8x256xf32>
    %cst = arith.constant 5.000000e-01 : f32
    %24 = vector.broadcast %cst : f32 to vector<8x256xf32>
    %25 = arith.mulf %24, %23 : vector<8x256xf32>
    %c0_9 = arith.constant 0 : index
    %c0_10 = arith.constant 0 : index
    %26 = vector.load %arg5[%c0_9, %c0_10] : memref<8x256xf32, #tpu.memory_space<vmem>>, vector<8x256xf32>
    tpu.vector_store %arg5[%c0_9, %c0_10], %25 {strides = array<i32>} : memref<8x256xf32, #tpu.memory_space<vmem>>, vector<8x256xf32>,
    %27 = arith.subf %15, %18 : vector<8x256xf32>
    %cst_11 = arith.constant 5.000000e-01 : f32
    %28 = vector.broadcast %cst_11 : f32 to vector<8x256xf32>
    %29 = arith.mulf %28, %27 : vector<8x256xf32>
    %c0_12 = arith.constant 0 : index
    %c0_13 = arith.constant 0 : index
    %30 = vector.load %arg6[%c0_12, %c0_13] : memref<8x256xf32, #tpu.memory_space<vmem>>, vector<8x256xf32>
    tpu.vector_store %arg6[%c0_12, %c0_13], %29 {strides = array<i32>} : memref<8x256xf32, #tpu.memory_space<vmem>>, vector<8x256xf32>,
    return
  }
  func.func @transform_0(%arg0: i32) -> (i32, i32) {
    %c0_i32 = arith.constant 0 : i32
    %c0_i32_0 = arith.constant 0 : i32
    %c0_i32_1 = arith.constant 0 : i32
    return %c0_i32, %c0_i32_0 : i32, i32
  }
  func.func @transform_1(%arg0: i32) -> (i32, i32) {
    %c0_i32 = arith.constant 0 : i32
    %c0_i32_0 = arith.constant 0 : i32
    return %arg0, %c0_i32 : i32, i32
  }
  func.func @transform_2(%arg0: i32) -> (i32, i32) {
    %c0_i32 = arith.constant 0 : i32
    %c0_i32_0 = arith.constant 0 : i32
    return %arg0, %c0_i32 : i32, i32
  }
  func.func @transform_3(%arg0: i32) -> (i32, i32) {
    %c0_i32 = arith.constant 0 : i32
    %c0_i32_0 = arith.constant 0 : i32
    return %arg0, %c0_i32 : i32, i32
  }
  func.func @transform_4(%arg0: i32) -> (i32, i32) {
    %c0_i32 = arith.constant 0 : i32
    %c0_i32_0 = arith.constant 0 : i32
    return %arg0, %c0_i32 : i32, i32
  }
  func.func @transform_5(%arg0: i32) -> (i32, i32) {
    %c0_i32 = arith.constant 0 : i32
    %c0_i32_0 = arith.constant 0 : i32
    return %arg0, %c0_i32 : i32, i32
  }
}

</mosaic_0001>

<bundles_post_ra>
// kernel: tpu_custom_call.1
= control target key start
LH: loop header
LB: loop body
LE: loop exit
PB: predicated region body
PF: predicated region fallthrough
CT: control target
= control target key end

     0   :  { %11 = vsyncpa [#allocation3], 0  ;;  %s516_s0 = inlined_call_operand.hbm [shape: s32[2,256], index: 0, kind: input, shape index: {}]   ;;  %s517_s1 = inlined_call_operand.hbm [shape: f32[8,256], index: 1, kind: input, shape index: {}]   ;;  %s518_s2 = inlined_call_operand.hbm [shape: f32[8,256], index: 2, kind: output, shape index: {0}]   ;;  %s519_s3 = inlined_call_operand.hbm [shape: f32[8,256], index: 3, kind: output, shape index: {1}]   ;;  %s520_s4 = inlined_call_operand.hbm [shape: f32[8,256], index: 4, kind: output, shape index: {2}]   ;;  %s521_s5 = inlined_call_operand.hbm [shape: f32[8,256], index: 5, kind: output, shape index: {3}]  }
   0x1   :  { %12 = vsyncpa [#allocation6], 0 }
   0x2   :  { %13 = vsyncpa [#allocation4], 0 }
   0x3   :  { %14 = vsyncpa [#allocation9], 0 }
   0x4   :  { %15 = vsyncpa [#allocation12], 0  ;;  %s351_s18 = smov [#allocation2]   ;;  %s352_s20 = smov [#allocation5]  }
   0x5   :  { %s22_s19 = sshll.u32 %s351_s18, 4  ;;  %s32_s21 = sshll.u32 %s352_s20, 4  ;;  %s23_s19 = int_to_ptr.vmem [resolvable:$true] %s22_s19  ;;  %s33_s21 = int_to_ptr.vmem [resolvable:$true] %s32_s21 }
   0x6   :  { %s209_s24 = scalar_lea.hbm %s516_s0, 64 }
   0x7   :  { %p210_p0 = scmp.ne.s32.totalorder %s516_s0, %s209_s24  ;;  %p213_p1 = scmp.lt.u32.totalorder %s209_s24, %s516_s0 }
   0x9   :  { %p215_p2 = pnand %p213_p1, %p210_p0 }
   0xb   :  { %218 = shalt.err (!%p215_p2)
}
   0xc   :  { %s219_s29 = scalar_lea.vmem %s23_s19, 64  ;;  %p224_p4 = scmp.lt.s32.totalorder %s23_s19, %s23_s19 }
   0xd   :  { %p220_p3 = scmp.ne.s32.totalorder %s23_s19, %s219_s29  ;;  %p225_p5 = scmp.lt.s32.totalorder %s219_s29, %s219_s29 }
   0xf   :  { %p226_p6 = por %p225_p5, %p224_p4 }
  0x11   :  { %p227_p7 = pnand %p226_p6, %p220_p3 }
  0x13   :  { %230 = shalt.err (!%p227_p7)
}
  0x14   :  { %25 = dma.hbm_to_vmem [thread:$0]  %s516_s0, 64, %s23_s19, [#allocation3]  }
  0x15   :  { %s231_s9 = scalar_lea.hbm %s517_s1, 256 }
  0x16   :  { %p232_p8 = scmp.ne.s32.totalorder %s517_s1, %s231_s9  ;;  %p235_p9 = scmp.lt.u32.totalorder %s231_s9, %s517_s1 }
  0x18   :  { %p237_p10 = pnand %p235_p9, %p232_p8 }
  0x1a   :  { %240 = shalt.err (!%p237_p10)
}
  0x1b   :  { %s241_s14 = scalar_lea.vmem %s33_s21, 256  ;;  %p246_p12 = scmp.lt.s32.totalorder %s33_s21, %s33_s21 }
  0x1c   :  { %p242_p11 = scmp.ne.s32.totalorder %s33_s21, %s241_s14  ;;  %p247_p13 = scmp.lt.s32.totalorder %s241_s14, %s241_s14 }
  0x1e   :  { %p248_p0 = por %p247_p13, %p246_p12 }
  0x20   :  { %p249_p1 = pnand %p248_p0, %p242_p11 }
  0x22   :  { %252 = shalt.err (!%p249_p1)
}
  0x23   :  { %35 = dma.hbm_to_vmem [thread:$0]  %s517_s1, 256, %s33_s21, [#allocation6]  }
  0x24   :  { %341 = dma.done.wait [#allocation3], 64  }
  0x25   :  { %342 = vsyncadd [#allocation3], 4294967232 }
  0x26   :  { %343 = dma.done.wait [#allocation6], 256  }
  0x27   :  { %344 = vsyncadd [#allocation6], 4294967040  ;;  %v418_v0 = vld [vmem:[#allocation5] sm:$0xff]  ;;  %s353_s16 = smov 15   ;;  %s354_s17 = smov 127   ;;  %v422_v1 = vld [vmem:[#allocation5 + $0x8] sm:$0xff]  ;;  %v48_v2 = vlaneseq }
  0x28   :  { %67 = vrot.lane.b32.xlu1 %v418_v0, %s353_s16  ;;  %60 = vrot.lane.b32.xlu0 %v418_v0, %s354_s17  ;;  %s355_s18 = smov 1   ;;  %s356_s1 = smov 113   ;;  %v88_v3 = vld [vmem:[#allocation2] ss:$2 sm:$0x3]  ;;  %v359_v7 = vmov 0  }
  0x29   :  { %s357_s19 = smov 112   ;;  %s358_s20 = smov 16   ;;  %v95_v4 = vshrl.u32 %v48_v2, 7  ;;  %vm89_vm0 = vcmp.ne.s32.totalorder %v88_v3, 0  ;;  %v434_v9 = vand.u32 127, %v48_v2 }
  0x2a   :  { %v93_v8 = vsel %vm89_vm0, 1, %v359_v7  ;;  %v91_v10 = vld [vmem:[#allocation2 + $0x1] ss:$2 sm:$0x3]  ;;  %s360_s21 = smov [#allocation8]  }
  0x2b   :  { %v96_v5 = vsub.s32 0, %v95_v4  ;;  %v100_v6 = vsub.s32 1, %v95_v4  ;;  %vm92_vm1 = vcmp.ne.s32.totalorder %v91_v10, 0  ;;  %vm71_vm2 = vcmp.lt.s32.totalorder %v434_v9, 15  ;;  %s155_s22 = sshll.u32 %s360_s21, 4  ;;  %s156_s22 = int_to_ptr.vmem [resolvable:$true] %s155_s22 }
  0x2c   :  { %69 = vrot.lane.b32.xlu1 %v422_v1, %s353_s16  ;;  %62 = vrot.lane.b32.xlu0 %v422_v1, %s354_s17  ;;  %vm64_vm3 = vcmp.lt.s32.totalorder %v434_v9, 127  ;;  %v106_v17 = vsel %vm92_vm1, 1, %v359_v7  ;;  %vm78_vm6 = vcmp.lt.s32.totalorder %v434_v9, 1  ;;  %vm85_vm7 = vcmp.lt.s32.totalorder %v434_v9, 113  ;;  %s253_s23 = scalar_lea.vmem %s156_s22, 256  ;;  %p258_p3 = scmp.lt.s32.totalorder %s156_s22, %s156_s22 }
  0x2d   :  { %v97_v11 = vrot.slane %v93_v8, %v96_v5  ;;  %v101_v12 = vrot.slane %v93_v8, %v100_v6  ;;  %v110_v26 = vrot.slane %v106_v17, %v96_v5  ;;  %v114_v27 = vrot.slane %v106_v17, %v100_v6  ;;  %p254_p2 = scmp.ne.s32.totalorder %s156_s22, %s253_s23  ;;  %p259_p4 = scmp.lt.s32.totalorder %s253_s23, %s253_s23 }
  0x2f   :  { %vm102_vm4 = vcmp.eq.s32.totalorder %v97_v11, 1  ;;  %vm103_vm5 = vcmp.eq.s32.totalorder %v101_v12, 1  ;;  %p260_p5 = por %p259_p4, %p258_p3 }
  0x30   :  { %76 = vrot.lane.b32.xlu1 %v422_v1, %s355_s18  ;;  %74 = vrot.lane.b32.xlu0 %v418_v0, %s355_s18 }
  0x31   :  { %p261_p6 = pnand %p260_p5, %p254_p2 }
  0x34   :  { %83 = vrot.lane.b32.xlu1 %v422_v1, %s356_s1  ;;  %81 = vrot.lane.b32.xlu0 %v418_v0, %s356_s1 }
  0x38   :  { %46 = vrot.lane.b32.xlu1 %v422_v1, %s357_s19  ;;  %44 = vrot.lane.b32.xlu0 %v418_v0, %s357_s19 }
  0x3c   :  { %55 = vrot.lane.b32.xlu1 %v422_v1, %s358_s20  ;;  %53 = vrot.lane.b32.xlu0 %v418_v0, %s358_s20 }
  0x9a   :  { %v68_v13 = vpop.permute.xlu1 %67  ;;  %v61_v14 = vpop.permute.xlu0 %60 }
  0x9e   :  { %v70_v15 = vpop.permute.xlu1 %69  ;;  %v63_v16 = vpop.permute.xlu0 %62 }
  0x9f   :  { %v72_v18 = vsel %vm71_vm2, %v68_v13, %v70_v15  ;;  %v73_v19 = vsel %vm71_vm2, %v70_v15, %v68_v13  ;;  %v65_v20 = vsel %vm64_vm3, %v61_v14, %v63_v16  ;;  %v66_v21 = vsel %vm64_vm3, %v63_v16, %v61_v14 }
  0xa0   :  { %v104_v22 = vsel %vm102_vm4, %v73_v19, %v65_v20  ;;  %v105_v23 = vsel %vm103_vm5, %v72_v18, %v66_v21 }
  0xa1   :  { %v123_v24 = vsub.f32 %v104_v22, %v418_v0  ;;  %v124_v25 = vsub.f32 %v105_v23, %v422_v1 }
  0xa2   :  { %v77_v28 = vpop.permute.xlu1 %76  ;;  %v75_v29 = vpop.permute.xlu0 %74 }
  0xa3   :  { %125 = vst [vmem:[#allocation8] sm:$0xff] %v123_v24  ;;  %126 = vst [vmem:[#allocation8 + $0x8] sm:$0xff] %v124_v25 }
  0xa4   :  { %264 = shalt.err (!%p261_p6)
}
  0xa5   :  { %s265_s26 = scalar_lea.hbm %s519_s3, 256 }
  0xa6   :  { %p266_p7 = scmp.ne.s32.totalorder %s519_s3, %s265_s26  ;;  %p269_p8 = scmp.lt.u32.totalorder %s265_s26, %s519_s3 }
  0xa8   :  { %p271_p9 = pnand %p269_p8, %p266_p7 }
  0xaa   :  { %274 = shalt.err (!%p271_p9)
}
  0xab   :  { %158 = dma.vmem_to_hbm [thread:$0]  %s156_s22, 256, %s519_s3, [#allocation9]   ;;  %vm115_vm8 = vcmp.eq.s32.totalorder %v110_v26, 1  ;;  %vm116_vm9 = vcmp.eq.s32.totalorder %v114_v27, 1  ;;  %v84_v30 = vpop.permute.xlu1 %83  ;;  %v82_v31 = vpop.permute.xlu0 %81  ;;  %v79_v32 = vsel %vm78_vm6, %v75_v29, %v77_v28  ;;  %v80_v33 = vsel %vm78_vm6, %v77_v28, %v75_v29 }
  0xac   :  { %v86_v34 = vsel %vm85_vm7, %v82_v31, %v84_v30  ;;  %v87_v35 = vsel %vm85_vm7, %v84_v30, %v82_v31  ;;  %vm50_vm10 = vcmp.lt.s32.totalorder %v434_v9, 112  ;;  %s361_s3 = smov [#allocation11]   ;;  %s362_s9 = smov [#allocation7]   ;;  %vm57_vm11 = vcmp.lt.s32.totalorder %v434_v9, 16 }
  0xad   :  { %v117_v36 = vsel %vm115_vm8, %v86_v34, %v80_v33  ;;  %v118_v37 = vsel %vm116_vm9, %v87_v35, %v79_v32  ;;  %s175_s8 = sshll.u32 %s361_s3, 4  ;;  %s145_s10 = sshll.u32 %s362_s9, 4  ;;  %s176_s8 = int_to_ptr.vmem [resolvable:$true] %s175_s8  ;;  %s466_s10 = int_to_ptr.vmem [resolvable:$true] %s145_s10 }
  0xae   :  { %v133_v38 = vsub.f32 %v104_v22, %v117_v36  ;;  %v134_v39 = vsub.f32 %v105_v23, %v118_v37  ;;  %s363_s11 = smov [#allocation10]   ;;  %s275_s13 = scalar_lea.vmem %s176_s8, 256 }
  0xaf   :  { %v47_v40 = vpop.permute.xlu1 %46  ;;  %v45_v41 = vpop.permute.xlu0 %44  ;;  %s468_s12 = sshll.u32 %s363_s11, 4  ;;  %p276_p10 = scmp.ne.s32.totalorder %s176_s8, %s275_s13  ;;  %s166_s12 = int_to_ptr.vmem [resolvable:$true] %s468_s12 }
  0xb0   :  { %v51_v42 = vsel %vm50_vm10, %v45_v41, %v47_v40  ;;  %v52_v43 = vsel %vm50_vm10, %v47_v40, %v45_v41  ;;  %v135_v44 = vmul.f32 0.5, %v133_v38  ;;  %v136_v45 = vmul.f32 0.5, %v134_v39  ;;  %p280_p11 = scmp.lt.s32.totalorder %s176_s8, %s176_s8  ;;  %p281_p12 = scmp.lt.s32.totalorder %s275_s13, %s275_s13 }
  0xb1   :  { %v119_v46 = vsub.f32 %v51_v42, %v418_v0  ;;  %v120_v47 = vsub.f32 %v52_v43, %v422_v1 }
  0xb2   :  { %137 = vst [vmem:[#allocation11] sm:$0xff] %v135_v44  ;;  %138 = vst [vmem:[#allocation11 + $0x8] sm:$0xff] %v136_v45  ;;  %p282_p13 = por %p281_p12, %p280_p11 }
  0xb3   :  { %121 = vst [vmem:[#allocation7] sm:$0xff] %v119_v46  ;;  %122 = vst [vmem:[#allocation7 + $0x8] sm:$0xff] %v120_v47  ;;  %v56_v48 = vpop.permute.xlu1 %55  ;;  %v54_v49 = vpop.permute.xlu0 %53 }
  0xb4   :  { %p283_p0 = pnand %p282_p13, %p276_p10 }
  0xb6   :  { %286 = shalt.err (!%p283_p0)
}
  0xb7   :  { %s287_s15 = scalar_lea.hbm %s521_s5, 256 }
  0xb8   :  { %p288_p1 = scmp.ne.s32.totalorder %s521_s5, %s287_s15  ;;  %p291_p2 = scmp.lt.u32.totalorder %s287_s15, %s521_s5 }
  0xba   :  { %p293_p3 = pnand %p291_p2, %p288_p1 }
  0xbc   :  { %296 = shalt.err (!%p293_p3)
}
  0xbd   :  { %178 = dma.vmem_to_hbm [thread:$0]  %s176_s8, 256, %s521_s5, [#allocation12]   ;;  %v58_v50 = vsel %vm57_vm11, %v54_v49, %v56_v48  ;;  %v59_v51 = vsel %vm57_vm11, %v56_v48, %v54_v49 }
  0xbe   :  { %s297_s21 = scalar_lea.vmem %s466_s10, 256  ;;  %p302_p5 = scmp.lt.s32.totalorder %s466_s10, %s466_s10 }
  0xbf   :  { %p298_p4 = scmp.ne.s32.totalorder %s466_s10, %s297_s21  ;;  %p303_p6 = scmp.lt.s32.totalorder %s297_s21, %s297_s21 }
  0xc1   :  { %p304_p7 = por %p303_p6, %p302_p5 }
  0xc3   :  { %p305_p8 = pnand %p304_p7, %p298_p4 }
  0xc5   :  { %308 = shalt.err (!%p305_p8)
}
  0xc6   :  { %s309_s24 = scalar_lea.hbm %s518_s2, 256 }
  0xc7   :  { %p310_p9 = scmp.ne.s32.totalorder %s518_s2, %s309_s24  ;;  %p313_p10 = scmp.lt.u32.totalorder %s309_s24, %s518_s2 }
  0xc9   :  { %p315_p11 = pnand %p313_p10, %p310_p9 }
  0xcb   :  { %318 = shalt.err (!%p315_p11)
}
  0xcc   :  { %148 = dma.vmem_to_hbm [thread:$0]  %s466_s10, 256, %s518_s2, [#allocation4]   ;;  %v127_v52 = vsub.f32 %v51_v42, %v59_v51  ;;  %v128_v53 = vsub.f32 %v52_v43, %v58_v50 }
  0xcd   :  { %s319_s30 = scalar_lea.vmem %s166_s12, 256  ;;  %p324_p13 = scmp.lt.s32.totalorder %s166_s12, %s166_s12 }
  0xce   :  { %v129_v54 = vmul.f32 0.5, %v127_v52  ;;  %v130_v55 = vmul.f32 0.5, %v128_v53  ;;  %p320_p12 = scmp.ne.s32.totalorder %s166_s12, %s319_s30  ;;  %p325_p0 = scmp.lt.s32.totalorder %s319_s30, %s319_s30 }
  0xd0   :  { %131 = vst [vmem:[#allocation10] sm:$0xff] %v129_v54  ;;  %132 = vst [vmem:[#allocation10 + $0x8] sm:$0xff] %v130_v55  ;;  %p326_p1 = por %p325_p0, %p324_p13 }
  0xd2   :  { %p327_p2 = pnand %p326_p1, %p320_p12 }
  0xd4   :  { %330 = shalt.err (!%p327_p2)
}
  0xd5   :  { %s331_s3 = scalar_lea.hbm %s520_s4, 256 }
  0xd6   :  { %p332_p3 = scmp.ne.s32.totalorder %s520_s4, %s331_s3  ;;  %p335_p4 = scmp.lt.u32.totalorder %s331_s3, %s520_s4 }
  0xd8   :  { %p337_p5 = pnand %p335_p4, %p332_p3 }
  0xda   :  { %340 = shalt.err (!%p337_p5)
}
  0xdb   :  { %168 = dma.vmem_to_hbm [thread:$0]  %s166_s12, 256, %s520_s4, [#allocation9]  }
  0xdc   :  { %345 = dma.done.wait [#allocation4], 256  }
  0xdd   :  { %346 = vsyncadd [#allocation4], 4294967040 }
  0xde   :  { %347 = dma.done.wait [#allocation9], 512  }
  0xdf   :  { %348 = vsyncadd [#allocation9], 4294966784 }
  0xe0   :  { %349 = dma.done.wait [#allocation12], 256  }
  0xe1   :  { %350 = vsyncadd [#allocation12], 4294967040 }
  0xe2   :  { %191 = vsyncpa [#allocation3], 1 }
  0xe3   :  { %192 = vsyncpa [#allocation6], 1 }
  0xe4   :  { %193 = vsyncpa [#allocation4], 1 }
  0xe5   :  { %194 = vsyncpa [#allocation9], 1 }
  0xe6   :  { %195 = vsyncpa [#allocation12], 1 }

</bundles_post_ra>
